<compile_context>
chip_gen: v7x
topology: tpu7x:2x2x1
jax: 0.10.0
libtpu: 0.0.40
codegen_flags: <defaults>
</compile_context>

<pallas_src>
import functools

import jax
import jax.numpy as jnp
from jax.experimental import pallas as pl
from jax.experimental.pallas import tpu as pltpu

_LANES = 128
_SUBLANES = 8
# ~2 MiB per input block: 2 inputs x 2 pipeline buffers = 8 MiB VMEM total,
# safe under v5e's 16 MiB scoped-VMEM default and v6e/v7x's 32 MiB.
_BLOCK_BYTES = 2 * 1024 * 1024


def _round_up(x, m):
    return ((x + m - 1) // m) * m


def _cdiv(a, b):
    return -(-a // b)


def _num_tensorcores():
    """Chunk count for the leading 'parallel' grid axis (== TensorCore count)."""
    try:
        kind = jax.devices()[0].device_kind.lower()
    except Exception:
        return 1
    # v7x exposes 2 TensorCores per chip; v5e/v6e have a single TC where an
    # extra chunk axis is pure overhead for a mem-bound streaming reduction.
    # TODO(synk): verify "parallel" really shards this axis across both v7x
    # TensorCores; if not, switch to pltpu.CORE_PARALLEL / pl.core_map.
    return 2 if "v7" in kind else 1


def _l1_sum_kernel(pred_ref, tgt_ref, out_ref, acc_ref, *,
                   rows, row_tile, steps, total_blocks):
    """Accumulate |pred - target| into a resident (8,128) vreg accumulator."""
    c = pl.program_id(0)
    i = pl.program_id(1)

    @pl.when(i == 0)
    def _():
        acc_ref[...] = jnp.zeros_like(acc_ref)

    # Global block index for this step (the input index_map clamps identically,
    # so a clamped duplicate block is fully masked out below).
    blk = c * steps + i
    blk_c = jnp.minimum(blk, total_blocks - 1)
    row0 = blk_c * row_tile
    row_ids = row0 + jax.lax.broadcasted_iota(jnp.int32, (row_tile, 1), 0)
    valid = (row_ids < rows) & (blk < total_blocks)

    diff = jnp.abs(pred_ref[...].astype(jnp.float32)
                   - tgt_ref[...].astype(jnp.float32))
    diff = jnp.where(valid, diff, 0.0)   # masks ragged last block / dup steps

    # Fold the (row_tile, 128) tile into a single (8, 128) vreg accumulator:
    # pure VPU adds per step, no per-step cross-lane XLU reduce.
    acc_ref[...] += diff.reshape(-1, _SUBLANES, _LANES).sum(axis=0)

    # Epilogue: one XLU reduce into the per-chunk scalar output on the last
    # reduction step -- avoids a separate tiny XLA reduction over partials.
    @pl.when(i == steps - 1)
    def _():
        out_ref[...] = jnp.sum(acc_ref[...]).reshape(1, 1)


@jax.jit
def pallas_l1_loss(pred, target):
    """Mean absolute error between two same-shaped arrays (nn.L1Loss())."""
    assert pred.shape == target.shape, (pred.shape, target.shape)
    n_elems = pred.size

    n_chunks = _num_tensorcores()

    # dtype-aware sublane rounding: f32 -> 8 rows, bf16 -> 16, int8/fp8 -> 32.
    def _sub_mult(dt):
        return _SUBLANES * max(1, 4 // jnp.dtype(dt).itemsize)

    sub_mult = max(_sub_mult(pred.dtype), _sub_mult(target.dtype))
    item_max = max(jnp.dtype(pred.dtype).itemsize,
                   jnp.dtype(target.dtype).itemsize)
    max_row_tile = max(
        sub_mult,
        (_BLOCK_BYTES // (_LANES * item_max)) // sub_mult * sub_mult)

    rows = _cdiv(n_elems, _LANES)       # lane-wide rows covering all elements
    pad = rows * _LANES - n_elems

    def to_slab(x):
        flat = jnp.ravel(x)
        if pad:
            # Only when n_elems isn't a multiple of 128 (atypical for derain
            # crops): zero lanes contribute |0 - 0| = 0 and the denominator
            # stays the true n_elems.
            # TODO(synk): this jnp.pad copies the input once in HBM; a split
            # main+tail path would avoid it for misaligned sizes.
            flat = jnp.pad(flat, (0, pad))
        return flat.reshape(rows, _LANES)

    row_tile = min(max_row_tile, _round_up(_cdiv(rows, n_chunks), sub_mult))
    total_blocks = _cdiv(rows, row_tile)          # only real blocks -- no
    n_chunks = max(1, min(n_chunks, total_blocks))  # tile*chunk zero-padding
    steps = _cdiv(total_blocks, n_chunks)

    def in_map(c, i):
        # Clamp so a (rare) leftover step reads a real block; the kernel masks
        # its contribution to zero via the (blk < total_blocks) condition.
        return (jnp.minimum(c * steps + i, total_blocks - 1), 0)

    kernel = functools.partial(_l1_sum_kernel, rows=rows, row_tile=row_tile,
                               steps=steps, total_blocks=total_blocks)

    partials = pl.pallas_call(
        kernel,
        out_shape=jax.ShapeDtypeStruct((n_chunks, 1), jnp.float32),
        grid_spec=pltpu.PrefetchScalarGridSpec(
            num_scalar_prefetch=0,
            grid=(n_chunks, steps),
            in_specs=[
                pl.BlockSpec((row_tile, _LANES), in_map),
                pl.BlockSpec((row_tile, _LANES), in_map),
            ],
            out_specs=pl.BlockSpec((1, 1), lambda c, i: (c, 0)),
            scratch_shapes=[pltpu.VMEM((_SUBLANES, _LANES), jnp.float32)],
        ),
        compiler_params=pltpu.CompilerParams(
            dimension_semantics=("parallel", "arbitrary")),
    )(to_slab(pred), to_slab(target))

    return jnp.sum(partials) / jnp.float32(n_elems)


class SetCriterion:
    """JAX port of the PyTorch SetCriterion wrapper (same forward semantics)."""

    def __init__(self, losses, weight_dict):
        self.weight_dict = weight_dict
        self.losses = losses
        # NOTE: mirrors the PyTorch quirk -- loss_dicts persists across calls.
        self.loss_dicts = {}

    def __call__(self, outputs, targets, *args, **kwargs):
        for k in self.losses.keys():
            loss = self.losses[k]
            if k == 'Loss':
                loss_dicts = loss(outputs, targets)
            else:
                loss_dicts = loss(outputs, targets, *args)
            if isinstance(loss_dicts, dict):
                self.loss_dicts.update(loss_dicts)
            else:
                self.loss_dicts.update({k: loss_dicts})
        return self.loss_dicts


if __name__ == "__main__":
    key = jax.random.PRNGKey(0)
    k1, k2 = jax.random.split(key)

    # Small derain-style example: NCHW images (model output vs. ground truth).
    outputs = jax.random.normal(k1, (2, 4, 16, 16), dtype=jnp.float32)
    targets = jax.random.normal(k2, (2, 4, 16, 16), dtype=jnp.float32)

    criterion = SetCriterion(losses={'Loss': pallas_l1_loss},
                             weight_dict={'Loss': 1})

    loss_dict = criterion(outputs, targets)
    loss_val = jax.block_until_ready(loss_dict['Loss'])

    # Cross-check against plain-JAX reference (nn.L1Loss default = mean).
    ref = jnp.mean(jnp.abs(outputs - targets))
    assert jnp.allclose(loss_val, ref, rtol=1e-5, atol=1e-6), (loss_val, ref)

    print("KERNEL_OK")
</pallas_src>

<mosaic_0001>
module attributes {stable_mosaic.version = 11 : i64} {
  func.func @_l1_sum_kernel(%arg0: i32, %arg1: i32, %arg2: memref<16x128xf32, #tpu.memory_space<vmem>>, %arg3: memref<16x128xf32, #tpu.memory_space<vmem>>, %arg4: memref<1x1xf32, #tpu.memory_space<vmem>>, %arg5: memref<8x128xf32, #tpu.memory_space<vmem>>) attributes {dimension_semantics = [#tpu.dimension_semantics<parallel>, #tpu.dimension_semantics<arbitrary>], iteration_bounds = array<i64: 1, 1>, scalar_prefetch = 0 : i64, scratch_operands = 1 : i64, tpu.core_type = #tpu.core_type<tc>, window_params = [{transform_indices = @transform_0, window_bounds = array<i64: 16, 128>}, {transform_indices = @transform_1, window_bounds = array<i64: 16, 128>}, {transform_indices = @transform_2, window_bounds = array<i64: 1, 1>}]} {
    %c0_i32 = arith.constant 0 : i32
    %0 = arith.cmpi eq, %arg1, %c0_i32 : i32
    %1 = arith.extui %0 : i1 to i32
    %c0_i32_0 = arith.constant 0 : i32
    %2 = arith.cmpi ne, %1, %c0_i32_0 : i32
    scf.if %2 {
      %cst_14 = arith.constant 0.000000e+00 : f32
      %31 = vector.broadcast %cst_14 : f32 to vector<8x128xf32>
      %c0_15 = arith.constant 0 : index
      %c0_16 = arith.constant 0 : index
      %32 = vector.load %arg5[%c0_15, %c0_16] : memref<8x128xf32, #tpu.memory_space<vmem>>, vector<8x128xf32>
      tpu.vector_store %arg5[%c0_15, %c0_16], %31 {strides = array<i32>} : memref<8x128xf32, #tpu.memory_space<vmem>>, vector<8x128xf32>,
    } else {
    }
    %c1_i32 = arith.constant 1 : i32
    %3 = arith.muli %arg0, %c1_i32 : i32
    %4 = arith.addi %3, %arg1 : i32
    %c0_i32_1 = arith.constant 0 : i32
    %5 = arith.minsi %4, %c0_i32_1 : i32
    %c16_i32 = arith.constant 16 : i32
    %6 = arith.muli %5, %c16_i32 : i32
    %7 = tpu.iota {dimensions = array<i32: 0>} : vector<16x1xi32>
    %8 = vector.broadcast %6 : i32 to vector<16x1xi32>
    %9 = arith.addi %8, %7 : vector<16x1xi32>
    %c16_i32_2 = arith.constant 16 : i32
    %10 = vector.broadcast %c16_i32_2 : i32 to vector<16x1xi32>
    %11 = arith.cmpi slt, %9, %10 : vector<16x1xi32>
    %c1_i32_3 = arith.constant 1 : i32
    %12 = arith.cmpi slt, %4, %c1_i32_3 : i32
    %13 = vector.broadcast %12 : i1 to vector<16x1xi1>
    %14 = arith.andi %11, %13 : vector<16x1xi1>
    %c0 = arith.constant 0 : index
    %c0_4 = arith.constant 0 : index
    %15 = vector.load %arg2[%c0, %c0_4] : memref<16x128xf32, #tpu.memory_space<vmem>>, vector<16x128xf32>
    %c0_5 = arith.constant 0 : index
    %c0_6 = arith.constant 0 : index
    %16 = vector.load %arg3[%c0_5, %c0_6] : memref<16x128xf32, #tpu.memory_space<vmem>>, vector<16x128xf32>
    %17 = arith.subf %15, %16 : vector<16x128xf32>
    %18 = math.absf %17 : vector<16x128xf32>
    %cst = arith.constant 0.000000e+00 : f32
    %19 = vector.shape_cast %14 : vector<16x1xi1> to vector<16x1xi1>
    %20 = vector.broadcast %19 : vector<16x1xi1> to vector<16x128xi1>
    %21 = vector.broadcast %cst : f32 to vector<16x128xf32>
    %22 = arith.select %20, %18, %21 : vector<16x128xi1>, vector<16x128xf32>
    %c0_7 = arith.constant 0 : index
    %c0_8 = arith.constant 0 : index
    %23 = vector.load %arg5[%c0_7, %c0_8] : memref<8x128xf32, #tpu.memory_space<vmem>>, vector<8x128xf32>
    %24 = vector.shape_cast %22 : vector<16x128xf32> to vector<2x8x128xf32>
    %cst_9 = arith.constant dense<0.000000e+00> : vector<8x128xf32>
    %25 = vector.multi_reduction <add>, %24, %cst_9 [0] : vector<2x8x128xf32> to vector<8x128xf32>
    %26 = arith.addf %23, %25 : vector<8x128xf32>
    %c0_10 = arith.constant 0 : index
    %c0_11 = arith.constant 0 : index
    %27 = vector.load %arg5[%c0_10, %c0_11] : memref<8x128xf32, #tpu.memory_space<vmem>>, vector<8x128xf32>
    tpu.vector_store %arg5[%c0_10, %c0_11], %26 {strides = array<i32>} : memref<8x128xf32, #tpu.memory_space<vmem>>, vector<8x128xf32>,
    %c0_i32_12 = arith.constant 0 : i32
    %28 = arith.cmpi eq, %arg1, %c0_i32_12 : i32
    %29 = arith.extui %28 : i1 to i32
    %c0_i32_13 = arith.constant 0 : i32
    %30 = arith.cmpi ne, %29, %c0_i32_13 : i32
    scf.if %30 {
      %c0_14 = arith.constant 0 : index
      %c0_15 = arith.constant 0 : index
      %31 = vector.load %arg5[%c0_14, %c0_15] : memref<8x128xf32, #tpu.memory_space<vmem>>, vector<8x128xf32>
      %32 = vector.shape_cast %31 : vector<8x128xf32> to vector<1x8x128xf32>
      %cst_16 = arith.constant dense<0.000000e+00> : vector<1xf32>
      %33 = vector.multi_reduction <add>, %32, %cst_16 [1, 2] : vector<1x8x128xf32> to vector<1xf32>
      %34 = vector.shape_cast %33 : vector<1xf32> to vector<1x1x1xf32>
      %35 = vector.extract %34[0, 0, 0] : f32 from vector<1x1x1xf32>
      %36 = vector.broadcast %35 : f32 to vector<1x1xf32>
      %c0_17 = arith.constant 0 : index
      %c0_18 = arith.constant 0 : index
      %37 = vector.load %arg4[%c0_17, %c0_18] : memref<1x1xf32, #tpu.memory_space<vmem>>, vector<1x1xf32>
      tpu.vector_store %arg4[%c0_17, %c0_18], %36 {strides = array<i32>} : memref<1x1xf32, #tpu.memory_space<vmem>>, vector<1x1xf32>,
    } else {
    }
    return
  }
  func.func @transform_0(%arg0: i32, %arg1: i32) -> (i32, i32) {
    %c1_i32 = arith.constant 1 : i32
    %0 = arith.muli %arg0, %c1_i32 : i32
    %1 = arith.addi %0, %arg1 : i32
    %c0_i32 = arith.constant 0 : i32
    %2 = arith.minsi %1, %c0_i32 : i32
    %c0_i32_0 = arith.constant 0 : i32
    %c0_i32_1 = arith.constant 0 : i32
    return %2, %c0_i32_0 : i32, i32
  }
  func.func @transform_1(%arg0: i32, %arg1: i32) -> (i32, i32) {
    %c1_i32 = arith.constant 1 : i32
    %0 = arith.muli %arg0, %c1_i32 : i32
    %1 = arith.addi %0, %arg1 : i32
    %c0_i32 = arith.constant 0 : i32
    %2 = arith.minsi %1, %c0_i32 : i32
    %c0_i32_0 = arith.constant 0 : i32
    %c0_i32_1 = arith.constant 0 : i32
    return %2, %c0_i32_0 : i32, i32
  }
  func.func @transform_2(%arg0: i32, %arg1: i32) -> (i32, i32) {
    %c0_i32 = arith.constant 0 : i32
    %c0_i32_0 = arith.constant 0 : i32
    return %arg0, %c0_i32 : i32, i32
  }
}

</mosaic_0001>

<bundles_post_ra>
// kernel: pallas_l1_loss.1
= control target key start
LH: loop header
LB: loop body
LE: loop exit
PB: predicated region body
PF: predicated region fallthrough
CT: control target
= control target key end

     0   :  { %s226_s0 = inlined_call_operand.vmem [shape: f32[16,128], index: 0, kind: input, shape index: {}]   ;;  %s227_s1 = inlined_call_operand.vmem [shape: f32[16,128], index: 1, kind: input, shape index: {}]   ;;  %s228_s2 = inlined_call_operand.hbm [shape: f32[1,1], index: 2, kind: output, shape index: {}]  }
   0x1   :  { %v99_v0 = vld [vmem:[%s226_s0] sm:$0xff]  ;;  %v100_v1 = vld [vmem:[%s226_s0 + $0x8] sm:$0xff] }
   0x2   :  { %v101_v2 = vld [vmem:[%s227_s1] sm:$0xff]  ;;  %v102_v3 = vld [vmem:[%s227_s1 + $0x8] sm:$0xff] }
   0x3   :  { %v103_v4 = vsub.f32 %v99_v0, %v101_v2 }
   0x4   :  { %7 = vsyncpa [#allocation4], 0  ;;  %v104_v5 = vsub.f32 %v100_v1, %v102_v3  ;;  %s186_s0 = smov [#allocation3]   ;;  %vm131_vm0 = vcmask 0  }
   0x5   :  { %v105_v6 = vand.u32 2147483647, %v103_v4  ;;  %s139_s17 = sshll.u32 %s186_s0, 4  ;;  %s140_s17 = int_to_ptr.vmem [resolvable:$true] %s139_s17 }
   0x6   :  { %v106_v7 = vand.u32 2147483647, %v104_v5  ;;  %s162_s1 = scalar_lea.vmem %s140_s17, 16  ;;  %s166_s19 = scalar_lea.vmem %s140_s17, 32 }
   0x7   :  { %p163_p0 = scmp.ne.s32.totalorder %s140_s17, %s162_s1  ;;  %p167_p1 = scmp.lt.s32.totalorder %s140_s17, %s140_s17 }
   0x8   :  { %v114_v8 = vadd.f32 %v106_v7, %v105_v6  ;;  %p168_p2 = scmp.lt.s32.totalorder %s166_s19, %s162_s1 }
   0xa   :  { %121 = vadd.xlane.f32.xlu0 %v114_v8  ;;  %p169_p3 = por %p168_p2, %p167_p1 }
   0xc   :  { %p170_p4 = pnand %p169_p3, %p163_p0 }
  0x97   :  { %v122_v9 = vpop.xlane.xlu0 %121 }
  0x98   :  { %v123_v10 = vrot.slane %v122_v9, 4 }
  0x9a   :  { %v124_v11 = vadd.f32 %v123_v10, %v122_v9 }
  0x9c   :  { %v125_v12 = vrot.slane %v124_v11, 2 }
  0x9e   :  { %v126_v13 = vadd.f32 %v125_v12, %v124_v11 }
  0xa0   :  { %v127_v14 = vrot.slane %v126_v13, 1 }
  0xa2   :  { %v128_v15 = vadd.f32 %v127_v14, %v126_v13 }
  0xa4   :  { %159 = vpush %v128_v15 }
  0xd5   :  { %s160_s18 = spop %159 }
  0xd6   :  { %v130_v16 = vstv %s160_s18 }
  0xd7   :  { %132 = vst.msk [vmem:[#allocation3] sm:$0x1] %vm131_vm0, %v130_v16 }
  0xd8   :  { %173 = shalt.err (!%p170_p4)
}
  0xd9   :  { %s174_s22 = scalar_lea.hbm %s228_s2, 16 }
  0xda   :  { %p175_p5 = scmp.ne.s32.totalorder %s228_s2, %s174_s22  ;;  %p178_p6 = scmp.lt.u32.totalorder %s174_s22, %s228_s2 }
  0xdc   :  { %p180_p7 = pnand %p178_p6, %p175_p5 }
  0xde   :  { %183 = shalt.err (!%p180_p7)
}
  0xdf   :  { %142 = dma.vmem_to_hbm [thread:$0]  %s140_s17, 16, %s228_s2, [#allocation4]  }
  0xe0   :  { %184 = dma.done.wait [#allocation4], 16  }
  0xe1   :  { %185 = vsyncadd [#allocation4], 4294967280 }
  0xe2   :  { %146 = vsyncpa [#allocation4], 1 }

</bundles_post_ra>
